<compile_context>
chip_gen: v7x
topology: tpu7x:2x2x1
jax: 0.10.0
libtpu: 0.0.40
codegen_flags: <defaults>
</compile_context>

<pallas_src>
import jax
import jax.numpy as jnp
from jax import lax
from jax.experimental import pallas as pl
from jax.experimental.pallas import tpu as pltpu


# ------------------------------------------------------------------ gen-aware budgets
def _vmem_and_tb_defaults():
    """(vmem_budget_bytes, vmem_limit_bytes, tb_max) for the local TPU generation."""
    cap = 64 * 1024 * 1024                      # conservative fallback (v7x per-TC)
    try:
        cap = int(pltpu.get_tpu_info().vmem_capacity_bytes)
    except Exception:
        pass
    kind = ""
    try:
        kind = jax.devices()[0].device_kind.lower()
    except Exception:
        pass
    # v6e: 128 MiB VMEM + 256-wide MXU -> bigger batch tiles pay off (TB up to 256).
    # v5e: MXU is 4x128^2 so M=128 is already native; v7x: only 64 MiB per TC.
    tb_max = 256 if "v6" in kind else 128
    budget = int(cap * 0.72)                    # headroom for Mosaic internal scratch
    limit = max(min(int(cap * 0.85), cap - (8 << 20)), 16 << 20)
    return budget, limit, tb_max


def _pick_block_b(B, S, D, *, mem_bytes, src_bytes, cdt_bytes, vmem_budget, tb_max):
    """Largest batch tile TB (multiple of 8, <= min(tb_max, B)) fitting the budget.
    Counts double-buffered DMA blocks, resident weights AND f32 intermediates."""
    if B <= 8:
        return max(int(B), 1)                   # single full block (block == array dim)

    weights = 2 * 3 * D * D * cdt_bytes         # 3 resident (D,D) weights, 2 buffers

    def need(tb):
        dma_blocks = (tb * S * D * mem_bytes    # memory_bank block
                      + tb * D * src_bytes      # source block
                      + tb * 4                  # lengths (int32)
                      + tb * S * 4              # expand (f32)
                      + tb * D * 4 + tb * S * 4)  # f32 output slabs
        interm = (tb * S * D * cdt_bytes        # bank cast to compute dtype
                  + 6 * tb * S * 4              # (TB,S) f32/i32 intermediates
                  + 4 * tb * D * 4)             # (TB,D) f32 intermediates
        return 2 * dma_blocks + weights + interm   # x2: double buffering

    tb = min(tb_max, (B // 8) * 8)
    while tb > 8 and need(tb) > vmem_budget:
        tb -= 8
    return max(8, tb)


# ------------------------------------------------------------------------------ kernel
def _attn_kernel(src_ref,    # (TB, D)     query rows (native dtype)
                 mem_ref,    # (TB, S, D)  word memory bank (native dtype, bf16 upstream)
                 lens_ref,   # (TB, 1)     int32 valid source lengths
                 exp_ref,    # (TB, S)     f32   expand = sent_align[word_sent_ids]
                 win_ref,    # (D, D)      linear_in.weight.T          (compute dtype)
                 woutc_ref,  # (D, D)      linear_out.weight[:, :D].T  (c half)
                 woutq_ref,  # (D, D)      linear_out.weight[:, D:].T  (q half)
                 outv_ref,   # (TB, D)     f32 attn_h
                 outa_ref):  # (TB, S)     f32 align_vectors
    f32 = jnp.float32
    cdt = win_ref.dtype                           # compute (storage) dtype, e.g. bf16

    src = src_ref[...].astype(cdt)                # (TB, D)
    mem = mem_ref[...].astype(cdt)                # (TB, S, D)  (no-op if already cdt)
    lens = lens_ref[...]                          # (TB, 1) int32
    expand = exp_ref[...].astype(f32)             # (TB, S)

    tb, s_len, d = mem.shape

    # ---- linear_in (general attention): rank-2 matmul, MXU M = TB ----
    q_proj = jnp.dot(src, win_ref[...], preferred_element_type=f32)        # (TB,D) f32

    # ---- scores: memory_bank as MXU LHS (contraction dim D already minor-most);
    #      only the tiny (1,D) q row and the (S,1) result need relayout. ----
    q3 = q_proj.astype(cdt).reshape(tb, 1, d)                              # (TB,1,D)
    scores = jnp.einsum('bkd,bqd->bkq', mem, q3,
                        preferred_element_type=f32).reshape(tb, s_len)     # (TB,S) f32

    # ---- length mask + softmax numerator (finite mask -> no NaN on empty rows) ----
    pos = lax.broadcasted_iota(jnp.int32, (tb, s_len), 1)
    valid = pos < lens
    scores = jnp.where(valid, scores, -1e30)
    m = jnp.max(scores, axis=-1, keepdims=True)
    p = jnp.where(valid, jnp.exp(scores - m), 0.0)                         # (TB,S)

    # ---- seqHRE rescale + renorm (softmax denom folded: p*e/sum(p*e)) ----
    w = p * expand
    norm = jnp.sum(w, axis=-1, keepdims=True)
    align = w * pl.reciprocal(norm + 1e-30, approx=True)                   # EUP slot

    # ---- context: per-row vec-mat; mem already in natural (K,N)=(S,D) layout ----
    a3 = align.astype(cdt).reshape(tb, 1, s_len)
    c = jnp.einsum('bqk,bkd->bqd', a3, mem,
                   preferred_element_type=f32).reshape(tb, d)              # (TB,D) f32

    # ---- linear_out([c, source]) + tanh; W_out pre-split -> no in-kernel concat ----
    attn_h = jnp.tanh(
        jnp.dot(c.astype(cdt), woutc_ref[...], preferred_element_type=f32)
        + jnp.dot(src, woutq_ref[...], preferred_element_type=f32))        # (TB,D)

    # lane-dense 2D slab stores
    outv_ref[...] = attn_h.astype(outv_ref.dtype)
    outa_ref[...] = align.astype(outa_ref.dtype)


# ----------------------------------------------------------------------------- wrapper
def prepare_params(w_in, w_out, dtype=jnp.bfloat16):
    """One-time weight prep (outside the per-decoding-step hot path):
      w_in : [D, D]   (linear_in.weight,  y = x @ w_in.T)
      w_out: [D, 2D]  (linear_out.weight, y = [c, q] @ w_out.T, no bias)"""
    D = w_in.shape[0]
    w_in_t = jnp.asarray(w_in).T.astype(dtype)               # (D, D)
    w_out_c_t = jnp.asarray(w_out)[:, :D].T.astype(dtype)    # (D, D)  multiplies c
    w_out_q_t = jnp.asarray(w_out)[:, D:].T.astype(dtype)    # (D, D)  multiplies source
    return w_in_t, w_out_c_t, w_out_q_t


def seqhre_word_attention(source, memory_bank, memory_lengths,
                          sent_align_vectors, word_sent_ids, params,
                          *, block_b=None, vmem_limit_bytes=None):
    """Returns (attn_h [B, D] f32, align_vectors [B, S] f32).

    memory_bank is streamed as-is (no padded / cast HBM copy) -- keep it bf16
    upstream for an HBM-bound kernel."""
    w_in_t, w_out_c_t, w_out_q_t = params
    B, S, D = memory_bank.shape
    cdt = w_in_t.dtype

    budget, limit, tb_max = _vmem_and_tb_defaults()
    if vmem_limit_bytes is not None:
        limit = int(vmem_limit_bytes)
    tb = block_b or _pick_block_b(
        B, S, D,
        mem_bytes=jnp.dtype(memory_bank.dtype).itemsize,
        src_bytes=jnp.dtype(source.dtype).itemsize,
        cdt_bytes=jnp.dtype(cdt).itemsize,
        vmem_budget=budget, tb_max=tb_max)

    # Cheap per-row prep only (no big-tensor copies):
    lens = memory_lengths.astype(jnp.int32).reshape(B, 1)
    expand = jnp.take_along_axis(sent_align_vectors.astype(jnp.float32),
                                 word_sent_ids.astype(jnp.int32), axis=1)   # (B,S)

    grid = (pl.cdiv(B, tb),)   # ragged tail handled by partial-block DMA + masked writes

    out_v, out_a = pl.pallas_call(
        _attn_kernel,
        out_shape=(jax.ShapeDtypeStruct((B, D), jnp.float32),
                   jax.ShapeDtypeStruct((B, S), jnp.float32)),
        grid=grid,
        in_specs=[
            pl.BlockSpec((tb, D), lambda i: (i, 0)),         # source
            pl.BlockSpec((tb, S, D), lambda i: (i, 0, 0)),   # memory_bank (streamed)
            pl.BlockSpec((tb, 1), lambda i: (i, 0)),         # lengths
            pl.BlockSpec((tb, S), lambda i: (i, 0)),         # expand (precomputed gather)
            pl.BlockSpec((D, D), lambda i: (0, 0)),          # W_in.T      (resident)
            pl.BlockSpec((D, D), lambda i: (0, 0)),          # W_out_c.T   (resident)
            pl.BlockSpec((D, D), lambda i: (0, 0)),          # W_out_q.T   (resident)
        ],
        out_specs=[
            pl.BlockSpec((tb, D), lambda i: (i, 0)),         # attn_h slab
            pl.BlockSpec((tb, S), lambda i: (i, 0)),         # align slab
        ],
        compiler_params=pltpu.CompilerParams(
            dimension_semantics=("parallel",),               # v7x: shard batch over 2 TCs
            vmem_limit_bytes=int(limit)),
    )(source, memory_bank, lens, expand, w_in_t, w_out_c_t, w_out_q_t)

    return out_v, out_a


# --------------------------------------------------------------------------- reference
def _reference(source, memory_bank, memory_lengths, sent_align, word_sent_ids,
               w_in, w_out, compute_dtype=jnp.bfloat16):
    """Pure-JAX mirror of the PyTorch forward with the same bf16 storage points."""
    f32 = jnp.float32
    B, S, D = memory_bank.shape
    src = source.astype(compute_dtype)
    mem = memory_bank.astype(compute_dtype)
    win_t = w_in.T.astype(compute_dtype)
    woutc_t = w_out[:, :D].T.astype(compute_dtype)
    woutq_t = w_out[:, D:].T.astype(compute_dtype)

    q_proj = jnp.dot(src, win_t, preferred_element_type=f32)
    scores = jnp.einsum('bd,bsd->bs', q_proj.astype(compute_dtype), mem,
                        preferred_element_type=f32)
    mask = jnp.arange(S)[None, :] < memory_lengths[:, None]
    scores = jnp.where(mask, scores, -1e30)
    align = jax.nn.softmax(scores, axis=-1)
    align = jnp.where(mask, align, 0.0)
    expand = jnp.take_along_axis(sent_align.astype(f32),
                                 word_sent_ids.astype(jnp.int32), axis=1)
    align = align * expand
    align = align / jnp.sum(align, axis=1, keepdims=True)
    c = jnp.einsum('bs,bsd->bd', align.astype(compute_dtype), mem,
                   preferred_element_type=f32)
    attn_h = jnp.tanh(jnp.dot(c.astype(compute_dtype), woutc_t,
                              preferred_element_type=f32)
                      + jnp.dot(src, woutq_t, preferred_element_type=f32))
    return attn_h, align


# -------------------------------------------------------------------------------- demo
def _make_inputs(key, B, S, D, SN):
    k1, k2, k3, k4 = jax.random.split(key, 4)
    source = jax.random.normal(k1, (B, D), dtype=jnp.float32)
    # Encoder memory bank is computed once per source; store it bf16 upstream.
    memory_bank = jax.random.normal(k2, (B, S, D), dtype=jnp.float32).astype(jnp.bfloat16)
    memory_lengths = jnp.maximum(
        jax.random.randint(k3, (B,), 1, S + 1, dtype=jnp.int32), 1)
    sent_align = jax.nn.softmax(
        jax.random.normal(k4, (B, SN), dtype=jnp.float32), axis=-1)
    word_sent_ids = jnp.broadcast_to(
        (jnp.arange(S, dtype=jnp.int32) * SN) // S, (B, S))
    return source, memory_bank, memory_lengths, sent_align, word_sent_ids


def _check(source, mem, lens, sal, wsid, w_in, w_out, params, block_b=None):
    attn_h, align = seqhre_word_attention(source, mem, lens, sal, wsid, params,
                                          block_b=block_b)
    jax.block_until_ready((attn_h, align))
    ref_h, ref_a = _reference(source, mem, lens, sal, wsid, w_in, w_out)
    B, S, D = mem.shape
    assert attn_h.shape == (B, D) and align.shape == (B, S)
    assert bool(jnp.all(jnp.isfinite(attn_h))) and bool(jnp.all(jnp.isfinite(align)))
    # bf16 storage + approx EUP reciprocal -> compare with matching tolerance
    assert jnp.allclose(attn_h, ref_h, atol=2e-2, rtol=2e-2)
    assert jnp.allclose(align, ref_a, atol=2e-2, rtol=2e-2)


if __name__ == "__main__":
    D, S, SN = 32, 16, 4
    key = jax.random.PRNGKey(0)
    kw1, kw2, kd1, kd2 = jax.random.split(key, 4)

    # nn.Linear shapes: linear_in.weight [D, D], linear_out.weight [D, 2D] (no bias)
    w_in = 0.1 * jax.random.normal(kw1, (D, D), dtype=jnp.float32)
    w_out = 0.1 * jax.random.normal(kw2, (D, 2 * D), dtype=jnp.float32)
    params = prepare_params(w_in, w_out)          # one-time prep, outside the hot path

    # TODO(synk): sent_position_tuple is only used for shape asserts in the PyTorch
    # forward; it does not affect the computation and is omitted here.

    # 1) small batch (single full block)
    _check(*_make_inputs(kd1, 2, S, D, SN), w_in, w_out, params)

    # 2) ragged batch exercising the partial-tail block path (grid=2, TB=8, B=11)
    _check(*_make_inputs(kd2, 11, S, D, SN), w_in, w_out, params, block_b=8)

    print("KERNEL_OK")
</pallas_src>

<mosaic_0001>
module attributes {stable_mosaic.version = 11 : i64} {
  func.func @_attn_kernel(%arg0: i32, %arg1: memref<2x32xf32, #tpu.memory_space<vmem>>, %arg2: memref<2x16x32xbf16, #tpu.memory_space<vmem>>, %arg3: memref<2x1xi32, #tpu.memory_space<vmem>>, %arg4: memref<2x16xf32, #tpu.memory_space<vmem>>, %arg5: memref<32x32xbf16, #tpu.memory_space<vmem>>, %arg6: memref<32x32xbf16, #tpu.memory_space<vmem>>, %arg7: memref<32x32xbf16, #tpu.memory_space<vmem>>, %arg8: memref<2x32xf32, #tpu.memory_space<vmem>>, %arg9: memref<2x16xf32, #tpu.memory_space<vmem>>) attributes {dimension_semantics = [#tpu.dimension_semantics<parallel>], iteration_bounds = array<i64: 1>, scalar_prefetch = 0 : i64, scratch_operands = 0 : i64, tpu.core_type = #tpu.core_type<tc>, window_params = [{transform_indices = @transform_0, window_bounds = array<i64: 2, 32>}, {transform_indices = @transform_1, window_bounds = array<i64: 2, 16, 32>}, {transform_indices = @transform_2, window_bounds = array<i64: 2, 1>}, {transform_indices = @transform_3, window_bounds = array<i64: 2, 16>}, {pipeline_mode = #tpu.pipeline_mode<synchronous>, transform_indices = @transform_4, window_bounds = array<i64: 32, 32>}, {pipeline_mode = #tpu.pipeline_mode<synchronous>, transform_indices = @transform_5, window_bounds = array<i64: 32, 32>}, {pipeline_mode = #tpu.pipeline_mode<synchronous>, transform_indices = @transform_6, window_bounds = array<i64: 32, 32>}, {transform_indices = @transform_7, window_bounds = array<i64: 2, 32>}, {transform_indices = @transform_8, window_bounds = array<i64: 2, 16>}]} {
    %c0 = arith.constant 0 : index
    %c0_0 = arith.constant 0 : index
    %0 = vector.load %arg1[%c0, %c0_0] : memref<2x32xf32, #tpu.memory_space<vmem>>, vector<2x32xf32>
    %1 = arith.truncf %0 : vector<2x32xf32> to vector<2x32xbf16>
    %c0_1 = arith.constant 0 : index
    %c0_2 = arith.constant 0 : index
    %c0_3 = arith.constant 0 : index
    %2 = vector.load %arg2[%c0_1, %c0_2, %c0_3] : memref<2x16x32xbf16, #tpu.memory_space<vmem>>, vector<2x16x32xbf16>
    %c0_4 = arith.constant 0 : index
    %c0_5 = arith.constant 0 : index
    %3 = vector.load %arg3[%c0_4, %c0_5] : memref<2x1xi32, #tpu.memory_space<vmem>>, vector<2x1xi32>
    %c0_6 = arith.constant 0 : index
    %c0_7 = arith.constant 0 : index
    %4 = vector.load %arg4[%c0_6, %c0_7] : memref<2x16xf32, #tpu.memory_space<vmem>>, vector<2x16xf32>
    %c0_8 = arith.constant 0 : index
    %c0_9 = arith.constant 0 : index
    %5 = vector.load %arg5[%c0_8, %c0_9] : memref<32x32xbf16, #tpu.memory_space<vmem>>, vector<32x32xbf16>
    %cst = arith.constant dense<0.000000e+00> : vector<2x32xf32>
    %6 = tpu.matmul %1, %5, %cst {dimension_numbers = #tpu.dot_dimension_numbers<[1], [0], [0], [1], [0, 0, 1, 1], [], []>} : vector<2x32xbf16>, vector<32x32xbf16>, vector<2x32xf32> -> vector<2x32xf32>
    %7 = arith.truncf %6 : vector<2x32xf32> to vector<2x32xbf16>
    %8 = vector.shape_cast %7 : vector<2x32xbf16> to vector<2x1x32xbf16>
    "tpu.trace_start"() <{level = 10 : i32, message = "bkd,bqd->bkq"}> : () -> ()
    %cst_10 = arith.constant dense<0.000000e+00> : vector<2x16x1xf32>
    %9 = tpu.matmul %2, %8, %cst_10 {dimension_numbers = #tpu.dot_dimension_numbers<[2], [2], [1], [1], [0, 0, 0, 1, 1, 1], [0], [0]>} : vector<2x16x32xbf16>, vector<2x1x32xbf16>, vector<2x16x1xf32> -> vector<2x16x1xf32>
    "tpu.trace_stop"() : () -> ()
    %10 = vector.shape_cast %9 : vector<2x16x1xf32> to vector<2x16xf32>
    %11 = tpu.iota {dimensions = array<i32: 1>} : vector<2x16xi32>
    %12 = vector.broadcast %3 : vector<2x1xi32> to vector<2x16xi32>
    %13 = arith.cmpi slt, %11, %12 : vector<2x16xi32>
    %cst_11 = arith.constant -1.000000e+30 : f32
    %14 = vector.broadcast %cst_11 : f32 to vector<2x16xf32>
    %15 = arith.select %13, %10, %14 : vector<2x16xi1>, vector<2x16xf32>
    %cst_12 = arith.constant dense<0xFF800000> : vector<2xf32>
    %16 = vector.multi_reduction <maximumf>, %15, %cst_12 [1] : vector<2x16xf32> to vector<2xf32>
    %17 = vector.shape_cast %16 : vector<2xf32> to vector<2x1xf32>
    %18 = vector.broadcast %17 : vector<2x1xf32> to vector<2x16xf32>
    %19 = arith.subf %15, %18 : vector<2x16xf32>
    %20 = math.exp %19 : vector<2x16xf32>
    %cst_13 = arith.constant 0.000000e+00 : f32
    %21 = vector.broadcast %cst_13 : f32 to vector<2x16xf32>
    %22 = arith.select %13, %20, %21 : vector<2x16xi1>, vector<2x16xf32>
    %23 = arith.mulf %22, %4 : vector<2x16xf32>
    %cst_14 = arith.constant dense<0.000000e+00> : vector<2xf32>
    %24 = vector.multi_reduction <add>, %23, %cst_14 [1] : vector<2x16xf32> to vector<2xf32>
    %25 = vector.shape_cast %24 : vector<2xf32> to vector<2x1xf32>
    %cst_15 = arith.constant 1.000000e-30 : f32
    %26 = vector.broadcast %cst_15 : f32 to vector<2x1xf32>
    %27 = arith.addf %25, %26 : vector<2x1xf32>
    %28 = tpu.reciprocal %27 {approx = true} : vector<2x1xf32> -> vector<2x1xf32>
    %29 = vector.broadcast %28 : vector<2x1xf32> to vector<2x16xf32>
    %30 = arith.mulf %23, %29 : vector<2x16xf32>
    %31 = arith.truncf %30 : vector<2x16xf32> to vector<2x16xbf16>
    %32 = vector.shape_cast %31 : vector<2x16xbf16> to vector<2x1x16xbf16>
    "tpu.trace_start"() <{level = 10 : i32, message = "bqk,bkd->bqd"}> : () -> ()
    %cst_16 = arith.constant dense<0.000000e+00> : vector<2x1x32xf32>
    %33 = tpu.matmul %32, %2, %cst_16 {dimension_numbers = #tpu.dot_dimension_numbers<[2], [1], [1], [2], [0, 0, 0, 1, 1, 2], [0], [0]>} : vector<2x1x16xbf16>, vector<2x16x32xbf16>, vector<2x1x32xf32> -> vector<2x1x32xf32>
    "tpu.trace_stop"() : () -> ()
    %34 = vector.shape_cast %33 : vector<2x1x32xf32> to vector<2x32xf32>
    %35 = arith.truncf %34 : vector<2x32xf32> to vector<2x32xbf16>
    %c0_17 = arith.constant 0 : index
    %c0_18 = arith.constant 0 : index
    %36 = vector.load %arg6[%c0_17, %c0_18] : memref<32x32xbf16, #tpu.memory_space<vmem>>, vector<32x32xbf16>
    %cst_19 = arith.constant dense<0.000000e+00> : vector<2x32xf32>
    %37 = tpu.matmul %35, %36, %cst_19 {dimension_numbers = #tpu.dot_dimension_numbers<[1], [0], [0], [1], [0, 0, 1, 1], [], []>} : vector<2x32xbf16>, vector<32x32xbf16>, vector<2x32xf32> -> vector<2x32xf32>
    %c0_20 = arith.constant 0 : index
    %c0_21 = arith.constant 0 : index
    %38 = vector.load %arg7[%c0_20, %c0_21] : memref<32x32xbf16, #tpu.memory_space<vmem>>, vector<32x32xbf16>
    %cst_22 = arith.constant dense<0.000000e+00> : vector<2x32xf32>
    %39 = tpu.matmul %1, %38, %cst_22 {dimension_numbers = #tpu.dot_dimension_numbers<[1], [0], [0], [1], [0, 0, 1, 1], [], []>} : vector<2x32xbf16>, vector<32x32xbf16>, vector<2x32xf32> -> vector<2x32xf32>
    %40 = arith.addf %37, %39 : vector<2x32xf32>
    %41 = math.tanh %40 : vector<2x32xf32>
    %c0_23 = arith.constant 0 : index
    %c0_24 = arith.constant 0 : index
    %42 = vector.load %arg8[%c0_23, %c0_24] : memref<2x32xf32, #tpu.memory_space<vmem>>, vector<2x32xf32>
    tpu.vector_store %arg8[%c0_23, %c0_24], %41 {strides = array<i32>} : memref<2x32xf32, #tpu.memory_space<vmem>>, vector<2x32xf32>,
    %c0_25 = arith.constant 0 : index
    %c0_26 = arith.constant 0 : index
    %43 = vector.load %arg9[%c0_25, %c0_26] : memref<2x16xf32, #tpu.memory_space<vmem>>, vector<2x16xf32>
    tpu.vector_store %arg9[%c0_25, %c0_26], %30 {strides = array<i32>} : memref<2x16xf32, #tpu.memory_space<vmem>>, vector<2x16xf32>,
    return
  }
  func.func @transform_0(%arg0: i32) -> (i32, i32) {
    %c0_i32 = arith.constant 0 : i32
    %c0_i32_0 = arith.constant 0 : i32
    return %arg0, %c0_i32 : i32, i32
  }
  func.func @transform_1(%arg0: i32) -> (i32, i32, i32) {
    %c0_i32 = arith.constant 0 : i32
    %c0_i32_0 = arith.constant 0 : i32
    %c0_i32_1 = arith.constant 0 : i32
    return %arg0, %c0_i32, %c0_i32_0 : i32, i32, i32
  }
  func.func @transform_2(%arg0: i32) -> (i32, i32) {
    %c0_i32 = arith.constant 0 : i32
    %c0_i32_0 = arith.constant 0 : i32
    return %arg0, %c0_i32 : i32, i32
  }
  func.func @transform_3(%arg0: i32) -> (i32, i32) {
    %c0_i32 = arith.constant 0 : i32
    %c0_i32_0 = arith.constant 0 : i32
    return %arg0, %c0_i32 : i32, i32
  }
  func.func @transform_4(%arg0: i32) -> (i32, i32) {
    %c0_i32 = arith.constant 0 : i32
    %c0_i32_0 = arith.constant 0 : i32
    %c0_i32_1 = arith.constant 0 : i32
    return %c0_i32, %c0_i32_0 : i32, i32
  }
  func.func @transform_5(%arg0: i32) -> (i32, i32) {
    %c0_i32 = arith.constant 0 : i32
    %c0_i32_0 = arith.constant 0 : i32
    %c0_i32_1 = arith.constant 0 : i32
    return %c0_i32, %c0_i32_0 : i32, i32
  }
  func.func @transform_6(%arg0: i32) -> (i32, i32) {
    %c0_i32 = arith.constant 0 : i32
    %c0_i32_0 = arith.constant 0 : i32
    %c0_i32_1 = arith.constant 0 : i32
    return %c0_i32, %c0_i32_0 : i32, i32
  }
  func.func @transform_7(%arg0: i32) -> (i32, i32) {
    %c0_i32 = arith.constant 0 : i32
    %c0_i32_0 = arith.constant 0 : i32
    return %arg0, %c0_i32 : i32, i32
  }
  func.func @transform_8(%arg0: i32) -> (i32, i32) {
    %c0_i32 = arith.constant 0 : i32
    %c0_i32_0 = arith.constant 0 : i32
    return %arg0, %c0_i32 : i32, i32
  }
}

</mosaic_0001>

<bundles_post_ra>
// kernel: tpu_custom_call.1
= control target key start
LH: loop header
LB: loop body
LE: loop exit
PB: predicated region body
PF: predicated region fallthrough
CT: control target
= control target key end

     0   :  { %14 = vsyncpa [#allocation3], 0  ;;  %s1093_s0 = inlined_call_operand.vmem [shape: f32[2,32], index: 0, kind: input, shape index: {}]   ;;  %s1094_s1 = inlined_call_operand.hbm [shape: bf16[2,16,32], index: 1, kind: input, shape index: {}]   ;;  %s1095_s2 = inlined_call_operand.vmem [shape: s32[2,1], index: 2, kind: input, shape index: {}]   ;;  %s1096_s3 = inlined_call_operand.hbm [shape: f32[2,16], index: 3, kind: input, shape index: {}]   ;;  %s1097_s4 = inlined_call_operand.vmem [shape: bf16[32,32], index: 4, kind: input, shape index: {}]   ;;  %s1098_s5 = inlined_call_operand.hbm [shape: bf16[32,32], index: 5, kind: input, shape index: {}]   ;;  %s1099_s6 = inlined_call_operand.hbm [shape: bf16[32,32], index: 6, kind: input, shape index: {}]   ;;  %s1100_s7 = inlined_call_operand.hbm [shape: f32[2,32], index: 7, kind: output, shape index: {0}]   ;;  %s1101_s8 = inlined_call_operand.hbm [shape: f32[2,16], index: 8, kind: output, shape index: {1}]  }
   0x1   :  { %15 = vsyncpa [#allocation6], 0 }
   0x2   :  { %16 = vsyncpa [#allocation9], 0 }
   0x3   :  { %17 = vsyncpa [#allocation4], 0 }
   0x4   :  { %18 = vsyncpa [#allocation12], 0  ;;  %s877_s27 = smov [#allocation5]   ;;  %s878_s29 = smov [#allocation2]  }
   0x5   :  { %s41_s28 = sshll.u32 %s877_s27, 4  ;;  %s26_s30 = sshll.u32 %s878_s29, 4  ;;  %s42_s28 = int_to_ptr.vmem [resolvable:$true] %s41_s28  ;;  %s934_s30 = int_to_ptr.vmem [resolvable:$true] %s26_s30 }
   0x6   :  { %s735_s11 = scalar_lea.hbm %s1096_s3, 32 }
   0x7   :  { %p736_p0 = scmp.ne.s32.totalorder %s1096_s3, %s735_s11  ;;  %p739_p1 = scmp.lt.u32.totalorder %s735_s11, %s1096_s3 }
   0x9   :  { %p741_p2 = pnand %p739_p1, %p736_p0 }
   0xb   :  { %744 = shalt.err (!%p741_p2)
}
   0xc   :  { %s745_s16 = scalar_lea.vmem %s42_s28, 32  ;;  %p750_p4 = scmp.lt.s32.totalorder %s42_s28, %s42_s28 }
   0xd   :  { %p746_p3 = scmp.ne.s32.totalorder %s42_s28, %s745_s16  ;;  %p751_p5 = scmp.lt.s32.totalorder %s745_s16, %s745_s16 }
   0xf   :  { %p752_p6 = por %p751_p5, %p750_p4 }
  0x11   :  { %p753_p7 = pnand %p752_p6, %p746_p3 }
  0x13   :  { %756 = shalt.err (!%p753_p7)
}
  0x14   :  { %44 = dma.hbm_to_vmem [thread:$0]  %s1096_s3, 32, %s42_s28, [#allocation6]  }
  0x15   :  { %s757_s21 = scalar_lea.hbm %s1094_s1, 256 }
  0x16   :  { %p758_p8 = scmp.ne.s32.totalorder %s1094_s1, %s757_s21  ;;  %p761_p9 = scmp.lt.u32.totalorder %s757_s21, %s1094_s1 }
  0x18   :  { %p763_p10 = pnand %p761_p9, %p758_p8 }
  0x1a   :  { %766 = shalt.err (!%p763_p10)
}
  0x1b   :  { %s767_s26 = scalar_lea.vmem %s934_s30, 256  ;;  %p772_p12 = scmp.lt.s32.totalorder %s934_s30, %s934_s30 }
  0x1c   :  { %p768_p11 = scmp.ne.s32.totalorder %s934_s30, %s767_s26  ;;  %p773_p13 = scmp.lt.s32.totalorder %s767_s26, %s767_s26 }
  0x1e   :  { %p774_p0 = por %p773_p13, %p772_p12 }
  0x20   :  { %p775_p1 = pnand %p774_p0, %p768_p11 }
  0x22   :  { %778 = shalt.err (!%p775_p1)
}
  0x23   :  { %s879_s3 = smov 64   ;;  %s880_s27 = smov 4  }
  0x24   :  { %32 = dma.hbm_to_vmem [thread:$0]  %s1094_s1, 256, %s934_s30, [#allocation3], %s879_s3, %s879_s3, %s880_s27  }
  0x25   :  { %s881_s9 = smov [#allocation7]   ;;  %s882_s11 = smov [#allocation8]  }
  0x26   :  { %s52_s10 = sshll.u32 %s881_s9, 4  ;;  %s64_s12 = sshll.u32 %s882_s11, 4  ;;  %s53_s10 = int_to_ptr.vmem [resolvable:$true] %s52_s10  ;;  %s968_s12 = int_to_ptr.vmem [resolvable:$true] %s64_s12 }
  0x27   :  { %s779_s15 = scalar_lea.hbm %s1098_s5, 256 }
  0x28   :  { %p780_p2 = scmp.ne.s32.totalorder %s1098_s5, %s779_s15  ;;  %p783_p3 = scmp.lt.u32.totalorder %s779_s15, %s1098_s5 }
  0x2a   :  { %p785_p4 = pnand %p783_p3, %p780_p2 }
  0x2c   :  { %788 = shalt.err (!%p785_p4)
}
  0x2d   :  { %s789_s1 = scalar_lea.vmem %s53_s10, 256  ;;  %p794_p6 = scmp.lt.s32.totalorder %s53_s10, %s53_s10 }
  0x2e   :  { %p790_p5 = scmp.ne.s32.totalorder %s53_s10, %s789_s1  ;;  %p795_p7 = scmp.lt.s32.totalorder %s789_s1, %s789_s1 }
  0x30   :  { %p796_p8 = por %p795_p7, %p794_p6 }
  0x32   :  { %p797_p9 = pnand %p796_p8, %p790_p5 }
  0x34   :  { %800 = shalt.err (!%p797_p9)
}
  0x35   :  { %58 = dma.hbm_to_vmem [thread:$0]  %s1098_s5, 256, %s53_s10, [#allocation6], %s879_s3, %s879_s3, %s880_s27  }
  0x36   :  { %s801_s23 = scalar_lea.hbm %s1099_s6, 256 }
  0x37   :  { %p802_p10 = scmp.ne.s32.totalorder %s1099_s6, %s801_s23  ;;  %p805_p11 = scmp.lt.u32.totalorder %s801_s23, %s1099_s6 }
  0x39   :  { %p807_p12 = pnand %p805_p11, %p802_p10 }
  0x3b   :  { %810 = shalt.err (!%p807_p12)
}
  0x3c   :  { %s811_s29 = scalar_lea.vmem %s968_s12, 256  ;;  %p816_p0 = scmp.lt.s32.totalorder %s968_s12, %s968_s12 }
  0x3d   :  { %p812_p13 = scmp.ne.s32.totalorder %s968_s12, %s811_s29  ;;  %p817_p1 = scmp.lt.s32.totalorder %s811_s29, %s811_s29 }
  0x3f   :  { %p818_p2 = por %p817_p1, %p816_p0 }
  0x41   :  { %p819_p3 = pnand %p818_p2, %p812_p13 }
  0x43   :  { %822 = shalt.err (!%p819_p3)
}
  0x44   :  { %70 = dma.hbm_to_vmem [thread:$0]  %s1099_s6, 256, %s968_s12, [#allocation9], %s879_s3, %s879_s3, %s880_s27  }
  0x45   :  { %867 = dma.done.wait [#allocation3], 256  }
  0x46   :  { %868 = vsyncadd [#allocation3], 4294967040 }
  0x47   :  { %869 = dma.done.wait [#allocation6], 288  }
  0x48   :  { %870 = vsyncadd [#allocation6], 4294967008 }
  0x49   :  { %871 = dma.done.wait [#allocation9], 256  }
  0x4a   :  { %872 = vsyncadd [#allocation9], 4294967040  ;;  %v883_v0 = vmov 0.0   ;;  %vm884_vm0 = vmmov 0   ;;  %v721_v1 = vld [vmem:[%s1097_s4] sm:$0xff]   ;;  %v722_v2 = vld [vmem:[%s1097_s4 + $0x8] sm:$0xff]   ;;  %v157_v8 = vlaneseq }
  0x4b   :  { %655 = vmatprep.subr.bf16.mxu0 %v883_v0  ;;  %659 = vmatprep.mubr.msk.bf16.mxu0 %vm884_vm0, %v883_v0  ;;  %v84_v3 = vld [vmem:[%s1093_s0] sm:$0x3]  ;;  %vm108_vm1 = vcmask 261120   ;;  %v885_v5 = vmov 0   ;;  %v886_v6 = vmov 1966171168  }
  0x4c   :  { %663 = vmatprep.subr.bf16.mxu1 %v883_v0  ;;  %665 = vmatprep.mubr.msk.bf16.mxu1 %vm884_vm0, %v883_v0  ;;  %v1021_v4 = vpack.c.bf16 %v84_v3, %v84_v3  ;;  %v155_v7 = vunpack.c.l.s4 %v886_v6  ;;  %v158_v10 = vshrl.u32 %v157_v8, 7  ;;  %v723_v27 = vld [vmem:[#allocation2] sm:$0xff]   ;;  %v724_v28 = vld [vmem:[#allocation2 + $0x8] sm:$0xff]   ;;  %v285_v38 = vand.u32 127, %v157_v8  ;;  %v91_v59 = vld [vmem:[#allocation5] sm:$0x3] }
  0x4d   :  { %656 = vmatpush3.bf16.msra.mxu0 %v721_v1  ;;  %719 = vset.pattern.permute.xlu0 %v885_v5  ;;  %v90_v37 = vld [vmem:[%s1095_s2] sm:$0x3]  ;;  %vm315_vm2 = vcmask 130112   ;;  %vm326_vm3 = vcmask 1041409   ;;  %vm330_vm5 = vcmask 123904   ;;  %vm369_vm6 = vcmask 130048  }
  0x4e   :  { %657 = vmatprep.subr.bf16.mxu0 %v883_v0  ;;  %720 = vset.pattern.permute.xlu1 %v885_v5  ;;  %v156_v9 = vunpack.c.0.s8 %v155_v7  ;;  %v1032_v19 = vsub.s32 0, %v158_v10  ;;  %v310_v39 = vadd.s32 4294967288, %v285_v38  ;;  %v308_v43 = vsub.s32 %v285_v38, %v158_v10  ;;  %s887_s2 = smov [#allocation11]  }
  0x4f   :  { %s606_s13 = sshll.u32 %s887_s2, 4  ;;  %s607_s13 = int_to_ptr.vmem [resolvable:$true] %s606_s13 }
  0x50   :  { %v1028_v11 = vsub.s32 %v156_v9, %v158_v10  ;;  %v313_v41 = vsub.s32 %v310_v39, %v158_v10  ;;  %s823_s14 = scalar_lea.vmem %s607_s13, 32  ;;  %p828_p5 = scmp.lt.s32.totalorder %s607_s13, %s607_s13 }
  0x51   :  { %658 = vmatpush3.bf16.msra.mxu0 %v722_v2  ;;  %p824_p4 = scmp.ne.s32.totalorder %s607_s13, %s823_s14  ;;  %p829_p6 = scmp.lt.s32.totalorder %s823_s14, %s823_s14 }
  0x52   :  { %669 = vmatprep.subr.bf16.mxu0 %v883_v0 }
  0x53   :  { %p830_p7 = por %p829_p6, %p828_p5 }
  0x54   :  { %660 = vmatmul.mubr.msk.bf16.vlgmr.msra.gmra.mrb[0].mxu0 %vm108_vm1, %v1021_v4 }
  0x55   :  { %671 = vmatprep.mubr.msk.bf16.mxu0 %vm884_vm0, %v883_v0  ;;  %p831_p8 = pnand %p830_p7, %p824_p4 }
 0x127   :  { %v146_v12 = vpop.f32.mrb[0].mxu0 }
 0x128   :  { %v152_v13 = vpack.c.bf16 %v146_v12, %v146_v12  ;;  %v661_v14 = vpop.f32.mrb[1].mxu0  ;;  %v725_v12 = vld [vmem:[#allocation8] sm:$0xff]  }
 0x129   :  { %v149_v15 = vpop.f32.mrb[2].mxu0 }
 0x12a   :  { %v160_v16 = vrot.slane %v152_v13, %v1028_v11  ;;  %v662_v17 = vpop.f32.mrb[3].mxu0 }
 0x12b   :  { %v728_v17 = vld [vmem:[#allocation7 + $0x8] sm:$0xff]  }
 0x12c   :  { %v167_v18 = vrot.slane %v160_v16, %v1028_v11  ;;  %v726_v16 = vld [vmem:[#allocation8 + $0x8] sm:$0xff]  }
 0x12e   :  { %v169_v20 = vunpack.i.h.s16 %v167_v18  ;;  %v625_v21 = vpack.i.b16 %v167_v18, %v167_v18 }
 0x130   :  { %v232_v22 = vpack.i.b16 %v169_v20, %v169_v20  ;;  %v179_v23 = vrot.slane %v625_v21, %v1032_v19 }
 0x132   :  { %v184_v24 = vsel %vm108_vm1, %v179_v23, 0  ;;  %v236_v25 = vrot.slane %v232_v22, %v1032_v19 }
 0x133   :  { %664 = vmatpush3.bf16.xpose.msra.mxu1 %v184_v24 }
 0x134   :  { %v241_v26 = vsel %vm108_vm1, %v236_v25, 0  ;;  %675 = vmatprep.subr.bf16.mxu1 %v883_v0 }
 0x135   :  { %670 = vmatpush3.bf16.xpose.msra.mxu0 %v241_v26 }
 0x136   :  { %681 = vmatprep.subr.bf16.mxu0 %v883_v0 }
 0x13a   :  { %666 = vmatmul.mubr.msk.bf16.vlgmr.msra.gmra.mrb[0].mxu1 %vm108_vm1, %v723_v27 }
 0x13b   :  { %676 = vmatpush3.bf16.msra.mxu1 %v723_v27  ;;  %677 = vmatprep.mubr.msk.bf16.mxu1 %vm884_vm0, %v883_v0 }
 0x13c   :  { %672 = vmatmul.mubr.msk.bf16.vlgmr.msra.gmra.mrb[4].mxu0 %vm108_vm1, %v724_v28  ;;  %687 = vmatprep.subr.bf16.mxu1 %v883_v0 }
 0x13d   :  { %682 = vmatpush3.bf16.msra.mxu0 %v724_v28  ;;  %683 = vmatprep.mubr.msk.bf16.mxu0 %vm884_vm0, %v883_v0 }
 0x20d   :  { %v220_v29 = vpop.f32.mrb[0].mxu1 }
 0x20e   :  { %295 = vperm.xlu0 %719, %v220_v29   ;;  %v667_v30 = vpop.f32.mrb[1].mxu1 }
 0x20f   :  { %v223_v31 = vpop.f32.mrb[2].mxu1  ;;  %v277_v32 = vpop.f32.mrb[4].mxu0 }
 0x210   :  { %v668_v33 = vpop.f32.mrb[3].mxu1  ;;  %301 = vperm.xlu1 %720, %v277_v32   ;;  %v673_v34 = vpop.f32.mrb[5].mxu0 }
 0x211   :  { %v280_v35 = vpop.f32.mrb[6].mxu0 }
 0x212   :  { %298 = vperm.xlu0 %719, %v223_v31   ;;  %v674_v36 = vpop.f32.mrb[7].mxu0 }
 0x214   :  { %304 = vperm.xlu1 %720, %v280_v35  }
 0x216   :  { %287 = vperm.xlu0 %719, %v90_v37  }
 0x28d   :  { %v296_v40 = vpop.permute.xlu0 %295 }
 0x28e   :  { %v309_v47 = vrot.slane %v296_v40, %v308_v43 }
 0x28f   :  { %v302_v42 = vpop.permute.xlu1 %301 }
 0x290   :  { %v320_v48 = vrot.slane %v302_v42, %v308_v43 }
 0x291   :  { %v299_v44 = vpop.permute.xlu0 %298 }
 0x292   :  { %v314_v45 = vrot.slane %v299_v44, %v313_v41 }
 0x293   :  { %v305_v46 = vpop.permute.xlu1 %304 }
 0x294   :  { %v324_v49 = vrot.slane %v305_v46, %v313_v41  ;;  %v316_v51 = vsel %vm315_vm2, %v314_v45, %v309_v47 }
 0x295   :  { %v288_v50 = vpop.permute.xlu0 %287 }
 0x296   :  { %vm289_vm4 = vcmp.lt.s32.totalorder %v285_v38, %v288_v50  ;;  %v325_v52 = vsel %vm315_vm2, %v324_v49, %v320_v48 }
 0x297   :  { %v327_v53 = vsel %vm326_vm3, %v325_v52, %v316_v51 }
 0x298   :  { %v329_v54 = vsel %vm289_vm4, %v327_v53, -1e+30 }
 0x299   :  { %v331_v55 = vsel %vm330_vm5, %v329_v54, -inf }
 0x29a   :  { %332 = vmax.xlane.f32.xlu1 %v331_v55 }
 0x327   :  { %v333_v56 = vpop.xlane.xlu1 %332 }
 0x328   :  { %v334_v57 = vsub.f32 %v329_v54, %v333_v56 }
 0x32a   :  { %v335_v58 = vmul.f32 1.442695, %v334_v57 }
 0x32c   :  { %729 = vpow2.f32 %v335_v58 }
 0x336   :  { %v730_v60 = vpop.eup %729 }
 0x337   :  { %v337_v61 = vsel %vm289_vm4, %v730_v60, 0.0 }
 0x338   :  { %v338_v62 = vmul.f32 %v337_v61, %v91_v59 }
 0x33a   :  { %v339_v63 = vsel %vm330_vm5, %v338_v62, 0.0 }
 0x33b   :  { %340 = vadd.xlane.f32.xlu0 %v339_v63 }
 0x3c8   :  { %v341_v1 = vpop.xlane.xlu0 %340 }
 0x3c9   :  { %v342_v2 = vadd.f32 1e-30, %v341_v1 }
 0x3cb   :  { %731 = vrcp.f32 %v342_v2 }
 0x3d5   :  { %v732_v3 = vpop.eup %731 }
 0x3d6   :  { %v344_v5 = vmul.f32 %v732_v3, %v338_v62 }
 0x3d8   :  { %v345_v6 = vpack.c.bf16 %v344_v5, %v344_v5  ;;  %589 = vst.msk [vmem:[#allocation11] sm:$0x3] %vm330_vm5, %v344_v5 }
 0x3da   :  { %v353_v7 = vrot.slane %v345_v6, %v1028_v11 }
 0x3dc   :  { %v360_v8 = vrot.slane %v353_v7, %v1028_v11  ;;  %v727_v11 = vld [vmem:[#allocation7] sm:$0xff]  }
 0x3de   :  { %v629_v9 = vpack.i.b16 %v360_v8, %v360_v8  ;;  %v362_v10 = vunpack.i.h.s16 %v360_v8 }
 0x3e0   :  { %v367_v13 = vrot.slane %v629_v9, %v1032_v19  ;;  %v413_v14 = vpack.i.b16 %v362_v10, %v362_v10 }
 0x3e2   :  { %678 = vmatmul.mubr.msk.bf16.vlgmr.msra.gmra.mrb[4].mxu1 %vm369_vm6, %v367_v13  ;;  %v417_v15 = vrot.slane %v413_v14, %v1032_v19 }
 0x3e3   :  { %688 = vmatpush3.bf16.msra.mxu1 %v725_v12  ;;  %691 = vmatprep.mubr.msk.bf16.mxu1 %vm884_vm0, %v883_v0 }
 0x3e4   :  { %684 = vmatmul.mubr.msk.bf16.vlgmr.msra.gmra.mrb[8].mxu0 %vm369_vm6, %v417_v15  ;;  %689 = vmatprep.subr.bf16.mxu1 %v883_v0 }
 0x3e7   :  { %690 = vmatpush3.bf16.msra.mxu1 %v726_v16 }
 0x3e8   :  { %695 = vmatprep.subr.bf16.mxu1 %v883_v0 }
 0x3ea   :  { %692 = vmatmul.mubr.msk.bf16.vlgmr.msra.gmra.mrb[8].mxu1 %vm108_vm1, %v1021_v4 }
 0x3eb   :  { %699 = vmatprep.mubr.msk.bf16.mxu1 %vm884_vm0, %v883_v0  ;;  %696 = vmatpush3.bf16.msra.mxu1 %v727_v11 }
 0x3ec   :  { %697 = vmatprep.subr.bf16.mxu1 %v883_v0 }
 0x3ef   :  { %698 = vmatpush3.bf16.msra.mxu1 %v728_v17 }
 0x4b5   :  { %v407_v18 = vpop.f32.mrb[4].mxu1 }
 0x4b6   :  { %v679_v19 = vpop.f32.mrb[5].mxu1  ;;  %v462_v22 = vpack.c.bf16 %v407_v18, %v407_v18 }
 0x4b7   :  { %v410_v20 = vpop.f32.mrb[6].mxu1  ;;  %v456_v21 = vpop.f32.mrb[8].mxu0 }
 0x4b8   :  { %v463_v23 = vpack.c.bf16 %v456_v21, %v456_v21  ;;  %v680_v24 = vpop.f32.mrb[7].mxu1  ;;  %v685_v25 = vpop.f32.mrb[9].mxu0  ;;  %v526_v28 = vunpack.c.l.b16 %v462_v22 }
 0x4b9   :  { %v459_v26 = vpop.f32.mrb[10].mxu0 }
 0x4ba   :  { %v527_v27 = vunpack.c.l.b16 %v463_v23  ;;  %v686_v4 = vpop.f32.mrb[11].mxu0 }
 0x4bc   :  { %v528_v29 = vrot.slane %v527_v27, 7 }
 0x4be   :  { %v529_v30 = vsel %vm326_vm3, %v528_v29, %v526_v28 }
 0x4bf   :  { %v530_v31 = vpack.c.b16 %v529_v30, %v529_v30 }
 0x4c1   :  { %700 = vmatmul.mubr.msk.bf16.vlgmr.msra.gmra.mrb[8].mxu1 %vm108_vm1, %v530_v31 }
 0x4c2   :  { %834 = shalt.err (!%p831_p8)
}
 0x4c3   :  { %s835_s17 = scalar_lea.hbm %s1101_s8, 32 }
 0x4c4   :  { %p836_p9 = scmp.ne.s32.totalorder %s1101_s8, %s835_s17  ;;  %p839_p10 = scmp.lt.u32.totalorder %s835_s17, %s1101_s8 }
 0x4c6   :  { %p841_p11 = pnand %p839_p10, %p836_p9 }
 0x4c8   :  { %844 = shalt.err (!%p841_p11)
}
 0x4c9   :  { %609 = dma.vmem_to_hbm [thread:$0]  %s607_s13, 32, %s1101_s8, [#allocation12]   ;;  %vm587_vm7 = vcmask 254976  }
 0x4ca   :  { %s888_s22 = smov [#allocation10]  }
 0x4cb   :  { %s596_s23 = sshll.u32 %s888_s22, 4  ;;  %s597_s23 = int_to_ptr.vmem [resolvable:$true] %s596_s23 }
 0x4cc   :  { %s845_s24 = scalar_lea.vmem %s597_s23, 32  ;;  %p850_p13 = scmp.lt.s32.totalorder %s597_s23, %s597_s23 }
 0x4cd   :  { %p846_p12 = scmp.ne.s32.totalorder %s597_s23, %s845_s24  ;;  %p851_p0 = scmp.lt.s32.totalorder %s845_s24, %s845_s24 }
 0x4cf   :  { %p852_p1 = por %p851_p0, %p850_p13 }
 0x4d1   :  { %p853_p2 = pnand %p852_p1, %p846_p12 }
 0x594   :  { %v580_v0 = vpop.f32.mrb[8].mxu1 }
 0x595   :  { %733 = vtanh.f32 %v580_v0  ;;  %v701_v32 = vpop.f32.mrb[9].mxu1 }
 0x596   :  { %v583_v33 = vpop.f32.mrb[10].mxu1 }
 0x597   :  { %v702_v34 = vpop.f32.mrb[11].mxu1 }
 0x59f   :  { %v734_v35 = vpop.eup %733 }
 0x5a0   :  { %588 = vst.msk [vmem:[#allocation10] sm:$0x3] %vm587_vm7, %v734_v35 }
 0x5a1   :  { %856 = shalt.err (!%p853_p2)
}
 0x5a2   :  { %s857_s26 = scalar_lea.hbm %s1100_s7, 32 }
 0x5a3   :  { %p858_p3 = scmp.ne.s32.totalorder %s1100_s7, %s857_s26  ;;  %p861_p4 = scmp.lt.u32.totalorder %s857_s26, %s1100_s7 }
 0x5a5   :  { %p863_p5 = pnand %p861_p4, %p858_p3 }
 0x5a7   :  { %866 = shalt.err (!%p863_p5)
}
 0x5a8   :  { %599 = dma.vmem_to_hbm [thread:$0]  %s597_s23, 32, %s1100_s7, [#allocation4]  }
 0x5a9   :  { %873 = dma.done.wait [#allocation4], 32  }
 0x5aa   :  { %874 = vsyncadd [#allocation4], 4294967264 }
 0x5ab   :  { %875 = dma.done.wait [#allocation12], 32  }
 0x5ac   :  { %876 = vsyncadd [#allocation12], 4294967264 }
 0x5ad   :  { %616 = vsyncpa [#allocation3], 1 }
 0x5ae   :  { %617 = vsyncpa [#allocation6], 1 }
 0x5af   :  { %618 = vsyncpa [#allocation9], 1 }
 0x5b0   :  { %619 = vsyncpa [#allocation4], 1 }
 0x5b1   :  { %620 = vsyncpa [#allocation12], 1 }

</bundles_post_ra>
